<compile_context>
chip_gen: v7x
topology: tpu7x:2x2x1
jax: 0.10.0
libtpu: 0.0.40
codegen_flags: <defaults>
</compile_context>

<pallas_src>
import functools

import jax
import jax.numpy as jnp
from jax.experimental import pallas as pl
from jax.experimental.pallas import tpu as pltpu


def temporal_encoder_kernel(x_ref, w_in_ref, b_gi_ref, w_hh_ref, b_gh_ref,
                            out_ref, *, T):
    """x_ref: (T*B, 2I) where cols [0:I]=x[t], [I:2I]=x[T-1-t].
    w_in_ref: (2I, 6H) block-diagonal input weights (fwd|bwd).
    b_gi_ref: (1, 6H) input bias with r/z b_hh folded in.
    w_hh_ref: (2H, 6H) block-diagonal hidden weights.
    b_gh_ref: (1, 6H) hidden bias (only n-gate columns nonzero).
    out_ref : (B, 2H) = [h_fwd_final | h_bwd_final]."""
    B, H2 = out_ref.shape          # H2 = 2H (both directions fused)
    G = 3 * H2                     # fused gate width 6H

    w_hh = w_hh_ref[...]
    # Pre-broadcast the hidden bias once (avoid per-iteration broadcast_in_dim).
    b_gh = jnp.broadcast_to(b_gh_ref[...], (B, G))

    # Hoisted input projection: one well-shaped matmul for all T steps and
    # both directions, fully outside the serial recurrence.
    gi_all = (jnp.dot(x_ref[...], w_in_ref[...],
                      preferred_element_type=jnp.float32)
              + b_gi_ref[...])                        # (T*B, 6H)

    h = jnp.zeros((B, H2), jnp.float32)               # [h_fwd | h_bwd]
    for t in range(T):                                # fully unrolled, T static
        gi = gi_all[t * B:(t + 1) * B, :]             # static sublane slice
        gh = jnp.dot(h, w_hh, preferred_element_type=jnp.float32) + b_gh
        r = jax.nn.sigmoid(gi[:, 0:H2] + gh[:, 0:H2])
        z = jax.nn.sigmoid(gi[:, H2:2 * H2] + gh[:, H2:2 * H2])
        n = jnp.tanh(gi[:, 2 * H2:3 * H2] + r * gh[:, 2 * H2:3 * H2])
        h = (1.0 - z) * n + z * h

    out_ref[...] = h.astype(out_ref.dtype)


def temporal_encoder_forward(latent_A_seq, params):
    """latent_A_seq: (B, T, I) -> (B, latent_dim_B). Matches torch.nn.GRU
    (bidirectional, batch_first) h_n concat semantics."""
    B, T, I = latent_A_seq.shape
    H = params["weight_ih_l0"].shape[0] // 3
    H2, G = 2 * H, 6 * H

    # time-major + pre-reversed backward stream, fused along features.
    x_tm = jnp.transpose(latent_A_seq, (1, 0, 2)).astype(jnp.float32)  # (T,B,I)
    x_rev = x_tm[::-1]                                                 # (T,B,I)
    x_pair = jnp.concatenate([x_tm, x_rev], axis=-1).reshape(T * B, 2 * I)

    def col(gate, direction):  # gate 0=r,1=z,2=n ; direction 0=fwd,1=bwd
        s = gate * H2 + direction * H
        return slice(s, s + H)

    wi = (params["weight_ih_l0"].astype(jnp.float32),
          params["weight_ih_l0_reverse"].astype(jnp.float32))   # (3H, I)
    wh = (params["weight_hh_l0"].astype(jnp.float32),
          params["weight_hh_l0_reverse"].astype(jnp.float32))   # (3H, H)
    bi = (params["bias_ih_l0"].astype(jnp.float32),
          params["bias_ih_l0_reverse"].astype(jnp.float32))     # (3H,)
    bh = (params["bias_hh_l0"].astype(jnp.float32),
          params["bias_hh_l0_reverse"].astype(jnp.float32))     # (3H,)

    W_in = jnp.zeros((2 * I, G), jnp.float32)   # block-diagonal input weights
    W_hh = jnp.zeros((H2, G), jnp.float32)      # block-diagonal hidden weights
    b_gi = jnp.zeros((1, G), jnp.float32)       # input bias (+ folded r/z b_hh)
    b_gh = jnp.zeros((1, G), jnp.float32)       # hidden bias (n gate only)
    for d in range(2):                          # 0 = forward, 1 = backward
        rin, rhid = slice(d * I, (d + 1) * I), slice(d * H, (d + 1) * H)
        for g in range(3):
            gsl = slice(g * H, (g + 1) * H)
            W_in = W_in.at[rin, col(g, d)].set(wi[d][gsl, :].T)
            W_hh = W_hh.at[rhid, col(g, d)].set(wh[d][gsl, :].T)
            fold = bi[d][gsl] + (bh[d][gsl] if g < 2 else 0.0)
            b_gi = b_gi.at[0, col(g, d)].set(fold)
        b_gh = b_gh.at[0, col(2, d)].set(bh[d][2 * H:3 * H])

    vmem = pl.BlockSpec(memory_space=pltpu.MemorySpace.VMEM)
    out = pl.pallas_call(
        functools.partial(temporal_encoder_kernel, T=T),
        out_shape=jax.ShapeDtypeStruct((B, H2), latent_A_seq.dtype),
        in_specs=[vmem] * 5,
        out_specs=vmem,
    )(x_pair, W_in, b_gi, W_hh, b_gh)
    return out
    # TODO(synk): if B grows on v7x, add a batch grid with
    # dimension_semantics=("parallel",) to use both TensorCores.


def reference_forward(x, params):
    """Pure-JAX reference matching torch.nn.GRU(bidirectional=True) h_n concat."""
    B, T, I = x.shape
    H = params["weight_ih_l0"].shape[0] // 3

    def cell(h, x_t, wi, wh, bi, bh):
        gi = x_t @ wi.T + bi
        gh = h @ wh.T + bh
        r = jax.nn.sigmoid(gi[:, :H] + gh[:, :H])
        z = jax.nn.sigmoid(gi[:, H:2 * H] + gh[:, H:2 * H])
        n = jnp.tanh(gi[:, 2 * H:] + r * gh[:, 2 * H:])
        return (1.0 - z) * n + z * h

    h_f = jnp.zeros((B, H), jnp.float32)
    h_b = jnp.zeros((B, H), jnp.float32)
    for t in range(T):
        h_f = cell(h_f, x[:, t], params["weight_ih_l0"], params["weight_hh_l0"],
                   params["bias_ih_l0"], params["bias_hh_l0"])
        h_b = cell(h_b, x[:, T - 1 - t], params["weight_ih_l0_reverse"],
                   params["weight_hh_l0_reverse"], params["bias_ih_l0_reverse"],
                   params["bias_hh_l0_reverse"])
    return jnp.concatenate([h_f, h_b], axis=1)


if __name__ == "__main__":
    # Small shapes consistent with the module: batch=2, seq=8, input_size=64,
    # latent_dim_B=8 (hidden per direction = 4).
    B, T, INPUT_SIZE, LATENT_DIM_B = 2, 8, 64, 8
    H = LATENT_DIM_B // 2

    key = jax.random.PRNGKey(0)
    keys = jax.random.split(key, 9)
    k = 1.0 / jnp.sqrt(jnp.float32(H))

    def u(kk, shape):
        return jax.random.uniform(kk, shape, jnp.float32, -k, k)

    # Deterministic synthetic GRU parameters (PyTorch nn.GRU shapes, gate order r,z,n).
    params = {
        "weight_ih_l0":         u(keys[0], (3 * H, INPUT_SIZE)),
        "weight_hh_l0":         u(keys[1], (3 * H, H)),
        "bias_ih_l0":           u(keys[2], (3 * H,)),
        "bias_hh_l0":           u(keys[3], (3 * H,)),
        "weight_ih_l0_reverse": u(keys[4], (3 * H, INPUT_SIZE)),
        "weight_hh_l0_reverse": u(keys[5], (3 * H, H)),
        "bias_ih_l0_reverse":   u(keys[6], (3 * H,)),
        "bias_hh_l0_reverse":   u(keys[7], (3 * H,)),
    }

    latent_A_seq = jax.random.normal(keys[8], (B, T, INPUT_SIZE), jnp.float32)

    out = temporal_encoder_forward(latent_A_seq, params)
    out = jax.block_until_ready(out)
    assert out.shape == (B, LATENT_DIM_B), out.shape

    ref = reference_forward(latent_A_seq, params)
    assert jnp.allclose(out, ref, atol=1e-5, rtol=1e-5), (out, ref)

    print("KERNEL_OK")
</pallas_src>

<mosaic_0001>
module attributes {stable_mosaic.version = 11 : i64} {
  func.func @temporal_encoder_kernel(%arg0: memref<16x128xf32, #tpu.memory_space<vmem>>, %arg1: memref<128x24xf32, #tpu.memory_space<vmem>>, %arg2: memref<1x24xf32, #tpu.memory_space<vmem>>, %arg3: memref<8x24xf32, #tpu.memory_space<vmem>>, %arg4: memref<1x24xf32, #tpu.memory_space<vmem>>, %arg5: memref<2x8xf32, #tpu.memory_space<vmem>>) attributes {dimension_semantics = [], scalar_prefetch = 0 : i64, scratch_operands = 0 : i64, tpu.core_type = #tpu.core_type<tc>} {
    %c0 = arith.constant 0 : index
    %c0_0 = arith.constant 0 : index
    %0 = vector.load %arg3[%c0, %c0_0] : memref<8x24xf32, #tpu.memory_space<vmem>>, vector<8x24xf32>
    %c0_1 = arith.constant 0 : index
    %c0_2 = arith.constant 0 : index
    %1 = vector.load %arg4[%c0_1, %c0_2] : memref<1x24xf32, #tpu.memory_space<vmem>>, vector<1x24xf32>
    %2 = vector.shape_cast %1 : vector<1x24xf32> to vector<1x24xf32>
    %3 = vector.broadcast %2 : vector<1x24xf32> to vector<2x24xf32>
    %c0_3 = arith.constant 0 : index
    %c0_4 = arith.constant 0 : index
    %4 = vector.load %arg0[%c0_3, %c0_4] : memref<16x128xf32, #tpu.memory_space<vmem>>, vector<16x128xf32>
    %c0_5 = arith.constant 0 : index
    %c0_6 = arith.constant 0 : index
    %5 = vector.load %arg1[%c0_5, %c0_6] : memref<128x24xf32, #tpu.memory_space<vmem>>, vector<128x24xf32>
    %cst = arith.constant dense<0.000000e+00> : vector<16x24xf32>
    %6 = tpu.matmul %4, %5, %cst {dimension_numbers = #tpu.dot_dimension_numbers<[1], [0], [0], [1], [0, 0, 1, 1], [], []>} : vector<16x128xf32>, vector<128x24xf32>, vector<16x24xf32> -> vector<16x24xf32>
    %c0_7 = arith.constant 0 : index
    %c0_8 = arith.constant 0 : index
    %7 = vector.load %arg2[%c0_7, %c0_8] : memref<1x24xf32, #tpu.memory_space<vmem>>, vector<1x24xf32>
    %8 = vector.broadcast %7 : vector<1x24xf32> to vector<16x24xf32>
    %9 = arith.addf %6, %8 : vector<16x24xf32>
    %cst_9 = arith.constant 0.000000e+00 : f32
    %10 = vector.broadcast %cst_9 : f32 to vector<2x8xf32>
    %11 = vector.extract_strided_slice %9 {offsets = [0, 0], sizes = [2, 24], strides = [1, 1]} : vector<16x24xf32> to vector<2x24xf32>
    %cst_10 = arith.constant dense<0.000000e+00> : vector<2x24xf32>
    %12 = tpu.matmul %10, %0, %cst_10 {dimension_numbers = #tpu.dot_dimension_numbers<[1], [0], [0], [1], [0, 0, 1, 1], [], []>} : vector<2x8xf32>, vector<8x24xf32>, vector<2x24xf32> -> vector<2x24xf32>
    %13 = arith.addf %12, %3 : vector<2x24xf32>
    %14 = vector.extract_strided_slice %11 {offsets = [0, 0], sizes = [2, 8], strides = [1, 1]} : vector<2x24xf32> to vector<2x8xf32>
    %15 = vector.extract_strided_slice %13 {offsets = [0, 0], sizes = [2, 8], strides = [1, 1]} : vector<2x24xf32> to vector<2x8xf32>
    %16 = arith.addf %14, %15 : vector<2x8xf32>
    %17 = arith.negf %16 : vector<2x8xf32>
    %18 = math.exp %17 : vector<2x8xf32>
    %cst_11 = arith.constant 1.000000e+00 : f32
    %19 = vector.broadcast %cst_11 : f32 to vector<2x8xf32>
    %20 = arith.addf %19, %18 : vector<2x8xf32>
    %21 = arith.divf %19, %20 : vector<2x8xf32>
    %22 = vector.extract_strided_slice %11 {offsets = [0, 8], sizes = [2, 8], strides = [1, 1]} : vector<2x24xf32> to vector<2x8xf32>
    %23 = vector.extract_strided_slice %13 {offsets = [0, 8], sizes = [2, 8], strides = [1, 1]} : vector<2x24xf32> to vector<2x8xf32>
    %24 = arith.addf %22, %23 : vector<2x8xf32>
    %25 = arith.negf %24 : vector<2x8xf32>
    %26 = math.exp %25 : vector<2x8xf32>
    %cst_12 = arith.constant 1.000000e+00 : f32
    %27 = vector.broadcast %cst_12 : f32 to vector<2x8xf32>
    %28 = arith.addf %27, %26 : vector<2x8xf32>
    %29 = arith.divf %27, %28 : vector<2x8xf32>
    %30 = vector.extract_strided_slice %11 {offsets = [0, 16], sizes = [2, 8], strides = [1, 1]} : vector<2x24xf32> to vector<2x8xf32>
    %31 = vector.extract_strided_slice %13 {offsets = [0, 16], sizes = [2, 8], strides = [1, 1]} : vector<2x24xf32> to vector<2x8xf32>
    %32 = arith.mulf %21, %31 : vector<2x8xf32>
    %33 = arith.addf %30, %32 : vector<2x8xf32>
    %34 = math.tanh %33 : vector<2x8xf32>
    %cst_13 = arith.constant 1.000000e+00 : f32
    %35 = vector.broadcast %cst_13 : f32 to vector<2x8xf32>
    %36 = arith.subf %35, %29 : vector<2x8xf32>
    %37 = arith.mulf %36, %34 : vector<2x8xf32>
    %38 = arith.mulf %29, %10 : vector<2x8xf32>
    %39 = arith.addf %37, %38 : vector<2x8xf32>
    %40 = vector.extract_strided_slice %9 {offsets = [2, 0], sizes = [2, 24], strides = [1, 1]} : vector<16x24xf32> to vector<2x24xf32>
    %cst_14 = arith.constant dense<0.000000e+00> : vector<2x24xf32>
    %41 = tpu.matmul %39, %0, %cst_14 {dimension_numbers = #tpu.dot_dimension_numbers<[1], [0], [0], [1], [0, 0, 1, 1], [], []>} : vector<2x8xf32>, vector<8x24xf32>, vector<2x24xf32> -> vector<2x24xf32>
    %42 = arith.addf %41, %3 : vector<2x24xf32>
    %43 = vector.extract_strided_slice %40 {offsets = [0, 0], sizes = [2, 8], strides = [1, 1]} : vector<2x24xf32> to vector<2x8xf32>
    %44 = vector.extract_strided_slice %42 {offsets = [0, 0], sizes = [2, 8], strides = [1, 1]} : vector<2x24xf32> to vector<2x8xf32>
    %45 = arith.addf %43, %44 : vector<2x8xf32>
    %46 = arith.negf %45 : vector<2x8xf32>
    %47 = math.exp %46 : vector<2x8xf32>
    %cst_15 = arith.constant 1.000000e+00 : f32
    %48 = vector.broadcast %cst_15 : f32 to vector<2x8xf32>
    %49 = arith.addf %48, %47 : vector<2x8xf32>
    %50 = arith.divf %48, %49 : vector<2x8xf32>
    %51 = vector.extract_strided_slice %40 {offsets = [0, 8], sizes = [2, 8], strides = [1, 1]} : vector<2x24xf32> to vector<2x8xf32>
    %52 = vector.extract_strided_slice %42 {offsets = [0, 8], sizes = [2, 8], strides = [1, 1]} : vector<2x24xf32> to vector<2x8xf32>
    %53 = arith.addf %51, %52 : vector<2x8xf32>
    %54 = arith.negf %53 : vector<2x8xf32>
    %55 = math.exp %54 : vector<2x8xf32>
    %cst_16 = arith.constant 1.000000e+00 : f32
    %56 = vector.broadcast %cst_16 : f32 to vector<2x8xf32>
    %57 = arith.addf %56, %55 : vector<2x8xf32>
    %58 = arith.divf %56, %57 : vector<2x8xf32>
    %59 = vector.extract_strided_slice %40 {offsets = [0, 16], sizes = [2, 8], strides = [1, 1]} : vector<2x24xf32> to vector<2x8xf32>
    %60 = vector.extract_strided_slice %42 {offsets = [0, 16], sizes = [2, 8], strides = [1, 1]} : vector<2x24xf32> to vector<2x8xf32>
    %61 = arith.mulf %50, %60 : vector<2x8xf32>
    %62 = arith.addf %59, %61 : vector<2x8xf32>
    %63 = math.tanh %62 : vector<2x8xf32>
    %cst_17 = arith.constant 1.000000e+00 : f32
    %64 = vector.broadcast %cst_17 : f32 to vector<2x8xf32>
    %65 = arith.subf %64, %58 : vector<2x8xf32>
    %66 = arith.mulf %65, %63 : vector<2x8xf32>
    %67 = arith.mulf %58, %39 : vector<2x8xf32>
    %68 = arith.addf %66, %67 : vector<2x8xf32>
    %69 = vector.extract_strided_slice %9 {offsets = [4, 0], sizes = [2, 24], strides = [1, 1]} : vector<16x24xf32> to vector<2x24xf32>
    %cst_18 = arith.constant dense<0.000000e+00> : vector<2x24xf32>
    %70 = tpu.matmul %68, %0, %cst_18 {dimension_numbers = #tpu.dot_dimension_numbers<[1], [0], [0], [1], [0, 0, 1, 1], [], []>} : vector<2x8xf32>, vector<8x24xf32>, vector<2x24xf32> -> vector<2x24xf32>
    %71 = arith.addf %70, %3 : vector<2x24xf32>
    %72 = vector.extract_strided_slice %69 {offsets = [0, 0], sizes = [2, 8], strides = [1, 1]} : vector<2x24xf32> to vector<2x8xf32>
    %73 = vector.extract_strided_slice %71 {offsets = [0, 0], sizes = [2, 8], strides = [1, 1]} : vector<2x24xf32> to vector<2x8xf32>
    %74 = arith.addf %72, %73 : vector<2x8xf32>
    %75 = arith.negf %74 : vector<2x8xf32>
    %76 = math.exp %75 : vector<2x8xf32>
    %cst_19 = arith.constant 1.000000e+00 : f32
    %77 = vector.broadcast %cst_19 : f32 to vector<2x8xf32>
    %78 = arith.addf %77, %76 : vector<2x8xf32>
    %79 = arith.divf %77, %78 : vector<2x8xf32>
    %80 = vector.extract_strided_slice %69 {offsets = [0, 8], sizes = [2, 8], strides = [1, 1]} : vector<2x24xf32> to vector<2x8xf32>
    %81 = vector.extract_strided_slice %71 {offsets = [0, 8], sizes = [2, 8], strides = [1, 1]} : vector<2x24xf32> to vector<2x8xf32>
    %82 = arith.addf %80, %81 : vector<2x8xf32>
    %83 = arith.negf %82 : vector<2x8xf32>
    %84 = math.exp %83 : vector<2x8xf32>
    %cst_20 = arith.constant 1.000000e+00 : f32
    %85 = vector.broadcast %cst_20 : f32 to vector<2x8xf32>
    %86 = arith.addf %85, %84 : vector<2x8xf32>
    %87 = arith.divf %85, %86 : vector<2x8xf32>
    %88 = vector.extract_strided_slice %69 {offsets = [0, 16], sizes = [2, 8], strides = [1, 1]} : vector<2x24xf32> to vector<2x8xf32>
    %89 = vector.extract_strided_slice %71 {offsets = [0, 16], sizes = [2, 8], strides = [1, 1]} : vector<2x24xf32> to vector<2x8xf32>
    %90 = arith.mulf %79, %89 : vector<2x8xf32>
    %91 = arith.addf %88, %90 : vector<2x8xf32>
    %92 = math.tanh %91 : vector<2x8xf32>
    %cst_21 = arith.constant 1.000000e+00 : f32
    %93 = vector.broadcast %cst_21 : f32 to vector<2x8xf32>
    %94 = arith.subf %93, %87 : vector<2x8xf32>
    %95 = arith.mulf %94, %92 : vector<2x8xf32>
    %96 = arith.mulf %87, %68 : vector<2x8xf32>
    %97 = arith.addf %95, %96 : vector<2x8xf32>
    %98 = vector.extract_strided_slice %9 {offsets = [6, 0], sizes = [2, 24], strides = [1, 1]} : vector<16x24xf32> to vector<2x24xf32>
    %cst_22 = arith.constant dense<0.000000e+00> : vector<2x24xf32>
    %99 = tpu.matmul %97, %0, %cst_22 {dimension_numbers = #tpu.dot_dimension_numbers<[1], [0], [0], [1], [0, 0, 1, 1], [], []>} : vector<2x8xf32>, vector<8x24xf32>, vector<2x24xf32> -> vector<2x24xf32>
    %100 = arith.addf %99, %3 : vector<2x24xf32>
    %101 = vector.extract_strided_slice %98 {offsets = [0, 0], sizes = [2, 8], strides = [1, 1]} : vector<2x24xf32> to vector<2x8xf32>
    %102 = vector.extract_strided_slice %100 {offsets = [0, 0], sizes = [2, 8], strides = [1, 1]} : vector<2x24xf32> to vector<2x8xf32>
    %103 = arith.addf %101, %102 : vector<2x8xf32>
    %104 = arith.negf %103 : vector<2x8xf32>
    %105 = math.exp %104 : vector<2x8xf32>
    %cst_23 = arith.constant 1.000000e+00 : f32
    %106 = vector.broadcast %cst_23 : f32 to vector<2x8xf32>
    %107 = arith.addf %106, %105 : vector<2x8xf32>
    %108 = arith.divf %106, %107 : vector<2x8xf32>
    %109 = vector.extract_strided_slice %98 {offsets = [0, 8], sizes = [2, 8], strides = [1, 1]} : vector<2x24xf32> to vector<2x8xf32>
    %110 = vector.extract_strided_slice %100 {offsets = [0, 8], sizes = [2, 8], strides = [1, 1]} : vector<2x24xf32> to vector<2x8xf32>
    %111 = arith.addf %109, %110 : vector<2x8xf32>
    %112 = arith.negf %111 : vector<2x8xf32>
    %113 = math.exp %112 : vector<2x8xf32>
    %cst_24 = arith.constant 1.000000e+00 : f32
    %114 = vector.broadcast %cst_24 : f32 to vector<2x8xf32>
    %115 = arith.addf %114, %113 : vector<2x8xf32>
    %116 = arith.divf %114, %115 : vector<2x8xf32>
    %117 = vector.extract_strided_slice %98 {offsets = [0, 16], sizes = [2, 8], strides = [1, 1]} : vector<2x24xf32> to vector<2x8xf32>
    %118 = vector.extract_strided_slice %100 {offsets = [0, 16], sizes = [2, 8], strides = [1, 1]} : vector<2x24xf32> to vector<2x8xf32>
    %119 = arith.mulf %108, %118 : vector<2x8xf32>
    %120 = arith.addf %117, %119 : vector<2x8xf32>
    %121 = math.tanh %120 : vector<2x8xf32>
    %cst_25 = arith.constant 1.000000e+00 : f32
    %122 = vector.broadcast %cst_25 : f32 to vector<2x8xf32>
    %123 = arith.subf %122, %116 : vector<2x8xf32>
    %124 = arith.mulf %123, %121 : vector<2x8xf32>
    %125 = arith.mulf %116, %97 : vector<2x8xf32>
    %126 = arith.addf %124, %125 : vector<2x8xf32>
    %127 = vector.extract_strided_slice %9 {offsets = [8, 0], sizes = [2, 24], strides = [1, 1]} : vector<16x24xf32> to vector<2x24xf32>
    %cst_26 = arith.constant dense<0.000000e+00> : vector<2x24xf32>
    %128 = tpu.matmul %126, %0, %cst_26 {dimension_numbers = #tpu.dot_dimension_numbers<[1], [0], [0], [1], [0, 0, 1, 1], [], []>} : vector<2x8xf32>, vector<8x24xf32>, vector<2x24xf32> -> vector<2x24xf32>
    %129 = arith.addf %128, %3 : vector<2x24xf32>
    %130 = vector.extract_strided_slice %127 {offsets = [0, 0], sizes = [2, 8], strides = [1, 1]} : vector<2x24xf32> to vector<2x8xf32>
    %131 = vector.extract_strided_slice %129 {offsets = [0, 0], sizes = [2, 8], strides = [1, 1]} : vector<2x24xf32> to vector<2x8xf32>
    %132 = arith.addf %130, %131 : vector<2x8xf32>
    %133 = arith.negf %132 : vector<2x8xf32>
    %134 = math.exp %133 : vector<2x8xf32>
    %cst_27 = arith.constant 1.000000e+00 : f32
    %135 = vector.broadcast %cst_27 : f32 to vector<2x8xf32>
    %136 = arith.addf %135, %134 : vector<2x8xf32>
    %137 = arith.divf %135, %136 : vector<2x8xf32>
    %138 = vector.extract_strided_slice %127 {offsets = [0, 8], sizes = [2, 8], strides = [1, 1]} : vector<2x24xf32> to vector<2x8xf32>
    %139 = vector.extract_strided_slice %129 {offsets = [0, 8], sizes = [2, 8], strides = [1, 1]} : vector<2x24xf32> to vector<2x8xf32>
    %140 = arith.addf %138, %139 : vector<2x8xf32>
    %141 = arith.negf %140 : vector<2x8xf32>
    %142 = math.exp %141 : vector<2x8xf32>
    %cst_28 = arith.constant 1.000000e+00 : f32
    %143 = vector.broadcast %cst_28 : f32 to vector<2x8xf32>
    %144 = arith.addf %143, %142 : vector<2x8xf32>
    %145 = arith.divf %143, %144 : vector<2x8xf32>
    %146 = vector.extract_strided_slice %127 {offsets = [0, 16], sizes = [2, 8], strides = [1, 1]} : vector<2x24xf32> to vector<2x8xf32>
    %147 = vector.extract_strided_slice %129 {offsets = [0, 16], sizes = [2, 8], strides = [1, 1]} : vector<2x24xf32> to vector<2x8xf32>
    %148 = arith.mulf %137, %147 : vector<2x8xf32>
    %149 = arith.addf %146, %148 : vector<2x8xf32>
    %150 = math.tanh %149 : vector<2x8xf32>
    %cst_29 = arith.constant 1.000000e+00 : f32
    %151 = vector.broadcast %cst_29 : f32 to vector<2x8xf32>
    %152 = arith.subf %151, %145 : vector<2x8xf32>
    %153 = arith.mulf %152, %150 : vector<2x8xf32>
    %154 = arith.mulf %145, %126 : vector<2x8xf32>
    %155 = arith.addf %153, %154 : vector<2x8xf32>
    %156 = vector.extract_strided_slice %9 {offsets = [10, 0], sizes = [2, 24], strides = [1, 1]} : vector<16x24xf32> to vector<2x24xf32>
    %cst_30 = arith.constant dense<0.000000e+00> : vector<2x24xf32>
    %157 = tpu.matmul %155, %0, %cst_30 {dimension_numbers = #tpu.dot_dimension_numbers<[1], [0], [0], [1], [0, 0, 1, 1], [], []>} : vector<2x8xf32>, vector<8x24xf32>, vector<2x24xf32> -> vector<2x24xf32>
    %158 = arith.addf %157, %3 : vector<2x24xf32>
    %159 = vector.extract_strided_slice %156 {offsets = [0, 0], sizes = [2, 8], strides = [1, 1]} : vector<2x24xf32> to vector<2x8xf32>
    %160 = vector.extract_strided_slice %158 {offsets = [0, 0], sizes = [2, 8], strides = [1, 1]} : vector<2x24xf32> to vector<2x8xf32>
    %161 = arith.addf %159, %160 : vector<2x8xf32>
    %162 = arith.negf %161 : vector<2x8xf32>
    %163 = math.exp %162 : vector<2x8xf32>
    %cst_31 = arith.constant 1.000000e+00 : f32
    %164 = vector.broadcast %cst_31 : f32 to vector<2x8xf32>
    %165 = arith.addf %164, %163 : vector<2x8xf32>
    %166 = arith.divf %164, %165 : vector<2x8xf32>
    %167 = vector.extract_strided_slice %156 {offsets = [0, 8], sizes = [2, 8], strides = [1, 1]} : vector<2x24xf32> to vector<2x8xf32>
    %168 = vector.extract_strided_slice %158 {offsets = [0, 8], sizes = [2, 8], strides = [1, 1]} : vector<2x24xf32> to vector<2x8xf32>
    %169 = arith.addf %167, %168 : vector<2x8xf32>
    %170 = arith.negf %169 : vector<2x8xf32>
    %171 = math.exp %170 : vector<2x8xf32>
    %cst_32 = arith.constant 1.000000e+00 : f32
    %172 = vector.broadcast %cst_32 : f32 to vector<2x8xf32>
    %173 = arith.addf %172, %171 : vector<2x8xf32>
    %174 = arith.divf %172, %173 : vector<2x8xf32>
    %175 = vector.extract_strided_slice %156 {offsets = [0, 16], sizes = [2, 8], strides = [1, 1]} : vector<2x24xf32> to vector<2x8xf32>
    %176 = vector.extract_strided_slice %158 {offsets = [0, 16], sizes = [2, 8], strides = [1, 1]} : vector<2x24xf32> to vector<2x8xf32>
    %177 = arith.mulf %166, %176 : vector<2x8xf32>
    %178 = arith.addf %175, %177 : vector<2x8xf32>
    %179 = math.tanh %178 : vector<2x8xf32>
    %cst_33 = arith.constant 1.000000e+00 : f32
    %180 = vector.broadcast %cst_33 : f32 to vector<2x8xf32>
    %181 = arith.subf %180, %174 : vector<2x8xf32>
    %182 = arith.mulf %181, %179 : vector<2x8xf32>
    %183 = arith.mulf %174, %155 : vector<2x8xf32>
    %184 = arith.addf %182, %183 : vector<2x8xf32>
    %185 = vector.extract_strided_slice %9 {offsets = [12, 0], sizes = [2, 24], strides = [1, 1]} : vector<16x24xf32> to vector<2x24xf32>
    %cst_34 = arith.constant dense<0.000000e+00> : vector<2x24xf32>
    %186 = tpu.matmul %184, %0, %cst_34 {dimension_numbers = #tpu.dot_dimension_numbers<[1], [0], [0], [1], [0, 0, 1, 1], [], []>} : vector<2x8xf32>, vector<8x24xf32>, vector<2x24xf32> -> vector<2x24xf32>
    %187 = arith.addf %186, %3 : vector<2x24xf32>
    %188 = vector.extract_strided_slice %185 {offsets = [0, 0], sizes = [2, 8], strides = [1, 1]} : vector<2x24xf32> to vector<2x8xf32>
    %189 = vector.extract_strided_slice %187 {offsets = [0, 0], sizes = [2, 8], strides = [1, 1]} : vector<2x24xf32> to vector<2x8xf32>
    %190 = arith.addf %188, %189 : vector<2x8xf32>
    %191 = arith.negf %190 : vector<2x8xf32>
    %192 = math.exp %191 : vector<2x8xf32>
    %cst_35 = arith.constant 1.000000e+00 : f32
    %193 = vector.broadcast %cst_35 : f32 to vector<2x8xf32>
    %194 = arith.addf %193, %192 : vector<2x8xf32>
    %195 = arith.divf %193, %194 : vector<2x8xf32>
    %196 = vector.extract_strided_slice %185 {offsets = [0, 8], sizes = [2, 8], strides = [1, 1]} : vector<2x24xf32> to vector<2x8xf32>
    %197 = vector.extract_strided_slice %187 {offsets = [0, 8], sizes = [2, 8], strides = [1, 1]} : vector<2x24xf32> to vector<2x8xf32>
    %198 = arith.addf %196, %197 : vector<2x8xf32>
    %199 = arith.negf %198 : vector<2x8xf32>
    %200 = math.exp %199 : vector<2x8xf32>
    %cst_36 = arith.constant 1.000000e+00 : f32
    %201 = vector.broadcast %cst_36 : f32 to vector<2x8xf32>
    %202 = arith.addf %201, %200 : vector<2x8xf32>
    %203 = arith.divf %201, %202 : vector<2x8xf32>
    %204 = vector.extract_strided_slice %185 {offsets = [0, 16], sizes = [2, 8], strides = [1, 1]} : vector<2x24xf32> to vector<2x8xf32>
    %205 = vector.extract_strided_slice %187 {offsets = [0, 16], sizes = [2, 8], strides = [1, 1]} : vector<2x24xf32> to vector<2x8xf32>
    %206 = arith.mulf %195, %205 : vector<2x8xf32>
    %207 = arith.addf %204, %206 : vector<2x8xf32>
    %208 = math.tanh %207 : vector<2x8xf32>
    %cst_37 = arith.constant 1.000000e+00 : f32
    %209 = vector.broadcast %cst_37 : f32 to vector<2x8xf32>
    %210 = arith.subf %209, %203 : vector<2x8xf32>
    %211 = arith.mulf %210, %208 : vector<2x8xf32>
    %212 = arith.mulf %203, %184 : vector<2x8xf32>
    %213 = arith.addf %211, %212 : vector<2x8xf32>
    %214 = vector.extract_strided_slice %9 {offsets = [14, 0], sizes = [2, 24], strides = [1, 1]} : vector<16x24xf32> to vector<2x24xf32>
    %cst_38 = arith.constant dense<0.000000e+00> : vector<2x24xf32>
    %215 = tpu.matmul %213, %0, %cst_38 {dimension_numbers = #tpu.dot_dimension_numbers<[1], [0], [0], [1], [0, 0, 1, 1], [], []>} : vector<2x8xf32>, vector<8x24xf32>, vector<2x24xf32> -> vector<2x24xf32>
    %216 = arith.addf %215, %3 : vector<2x24xf32>
    %217 = vector.extract_strided_slice %214 {offsets = [0, 0], sizes = [2, 8], strides = [1, 1]} : vector<2x24xf32> to vector<2x8xf32>
    %218 = vector.extract_strided_slice %216 {offsets = [0, 0], sizes = [2, 8], strides = [1, 1]} : vector<2x24xf32> to vector<2x8xf32>
    %219 = arith.addf %217, %218 : vector<2x8xf32>
    %220 = arith.negf %219 : vector<2x8xf32>
    %221 = math.exp %220 : vector<2x8xf32>
    %cst_39 = arith.constant 1.000000e+00 : f32
    %222 = vector.broadcast %cst_39 : f32 to vector<2x8xf32>
    %223 = arith.addf %222, %221 : vector<2x8xf32>
    %224 = arith.divf %222, %223 : vector<2x8xf32>
    %225 = vector.extract_strided_slice %214 {offsets = [0, 8], sizes = [2, 8], strides = [1, 1]} : vector<2x24xf32> to vector<2x8xf32>
    %226 = vector.extract_strided_slice %216 {offsets = [0, 8], sizes = [2, 8], strides = [1, 1]} : vector<2x24xf32> to vector<2x8xf32>
    %227 = arith.addf %225, %226 : vector<2x8xf32>
    %228 = arith.negf %227 : vector<2x8xf32>
    %229 = math.exp %228 : vector<2x8xf32>
    %cst_40 = arith.constant 1.000000e+00 : f32
    %230 = vector.broadcast %cst_40 : f32 to vector<2x8xf32>
    %231 = arith.addf %230, %229 : vector<2x8xf32>
    %232 = arith.divf %230, %231 : vector<2x8xf32>
    %233 = vector.extract_strided_slice %214 {offsets = [0, 16], sizes = [2, 8], strides = [1, 1]} : vector<2x24xf32> to vector<2x8xf32>
    %234 = vector.extract_strided_slice %216 {offsets = [0, 16], sizes = [2, 8], strides = [1, 1]} : vector<2x24xf32> to vector<2x8xf32>
    %235 = arith.mulf %224, %234 : vector<2x8xf32>
    %236 = arith.addf %233, %235 : vector<2x8xf32>
    %237 = math.tanh %236 : vector<2x8xf32>
    %cst_41 = arith.constant 1.000000e+00 : f32
    %238 = vector.broadcast %cst_41 : f32 to vector<2x8xf32>
    %239 = arith.subf %238, %232 : vector<2x8xf32>
    %240 = arith.mulf %239, %237 : vector<2x8xf32>
    %241 = arith.mulf %232, %213 : vector<2x8xf32>
    %242 = arith.addf %240, %241 : vector<2x8xf32>
    %c0_42 = arith.constant 0 : index
    %c0_43 = arith.constant 0 : index
    %243 = vector.load %arg5[%c0_42, %c0_43] : memref<2x8xf32, #tpu.memory_space<vmem>>, vector<2x8xf32>
    tpu.vector_store %arg5[%c0_42, %c0_43], %242 {strides = array<i32>} : memref<2x8xf32, #tpu.memory_space<vmem>>, vector<2x8xf32>,
    return
  }
}

</mosaic_0001>

<bundles_post_ra>
// kernel: tpu_custom_call.1
= control target key start
LH: loop header
LB: loop body
LE: loop exit
PB: predicated region body
PF: predicated region fallthrough
CT: control target
= control target key end

     0   :  { %v1222_v3 = vmov 0.0   ;;  %vm1223_vm0 = vmmov 0   ;;  %s1437_s0 = inlined_call_operand.vmem [shape: f32[16,128], index: 0, kind: input, shape index: {}]   ;;  %s1438_s1 = inlined_call_operand.vmem [shape: f32[128,24], index: 1, kind: input, shape index: {}]   ;;  %s1439_s2 = inlined_call_operand.vmem [shape: f32[1,24], index: 2, kind: input, shape index: {}]   ;;  %s1440_s3 = inlined_call_operand.vmem [shape: f32[8,24], index: 3, kind: input, shape index: {}]   ;;  %s1441_s4 = inlined_call_operand.vmem [shape: f32[1,24], index: 4, kind: input, shape index: {}]   ;;  %s1442_s5 = inlined_call_operand.hbm [shape: f32[2,8], index: 5, kind: output, shape index: {}]  }
   0x1   :  { %v1261_v0 = vld [vmem:[%s1440_s3] sm:$0xff]  ;;  %v32_v2 = vld [vmem:[%s1438_s1 + $0x8] sm:$0xff]  ;;  %1072 = vmatprep.subr.mxu1 %v1222_v3  ;;  %1074 = vmatprep.mubr.msk.f32.mxu1 %vm1223_vm0, %v1222_v3  ;;  %v33_v5 = vld [vmem:[%s1438_s1 + $0x10] sm:$0xff] }
   0x2   :  { %v31_v1 = vld [vmem:[%s1438_s1] sm:$0xff]  ;;  %v34_v6 = vld [vmem:[%s1438_s1 + $0x18] sm:$0xff]  ;;  %1073 = vmatpush3.msra.mxu1 %v1261_v0  ;;  %v36_v9 = vld [vmem:[%s1438_s1 + $0x28] sm:$0xff] }
   0x3   :  { %v1112_v4 = vpack.c.bf16 %v32_v2, %v31_v1  ;;  %v1116_v7 = vpack.c.bf16 %v34_v6, %v33_v5  ;;  %v35_v8 = vld [vmem:[%s1438_s1 + $0x20] sm:$0xff]  ;;  %1075 = vmatmul.mubr.f32.vlgmr.msra.gmra.mrb[0].mxu1 %v1222_v3  ;;  %1077 = vmatprep.subr.mxu1 %v1222_v3  ;;  %v37_v12 = vld [vmem:[%s1438_s1 + $0x30] sm:$0xff]  ;;  %v38_v13 = vld [vmem:[%s1438_s1 + $0x38] sm:$0xff] }
   0x4   :  { %v1120_v10 = vpack.c.bf16 %v36_v9, %v35_v8  ;;  %v29_v11 = vld [vmem:[%s1437_s0] sm:$0xff]  ;;  %1078 = vmatpush3.msra.mxu1 %v1261_v0  ;;  %1079 = vmatprep.mubr.msk.f32.mxu1 %vm1223_vm0, %v1222_v3 }
   0x5   :  { %1113 = vmatprep.subr.bf16.mxu0 %v1112_v4  ;;  %1069 = vmatprep.mubr.f32.mxu0 %v29_v11 }
   0x6   :  { %1115 = vmatpush3.bf16.msra.mxu0 %v1112_v4 }
   0x7   :  { %1117 = vmatprep.subr.bf16.mxu0 %v1116_v7 }
   0x8   :  { %10 = vsyncpa [#allocation3], 0  ;;  %1082 = vmatprep.subr.mxu1 %v1222_v3  ;;  %v1124_v14 = vpack.c.bf16 %v38_v13, %v37_v12  ;;  %v39_v15 = vld [vmem:[%s1438_s1 + $0x40] sm:$0xff]  ;;  %v40_v16 = vld [vmem:[%s1438_s1 + $0x48] sm:$0xff]  ;;  %vm129_vm1 = vcmask 64512   ;;  %vm970_vm2 = vcmask 64518  }
   0x9   :  { %v1128_v17 = vpack.c.bf16 %v40_v16, %v39_v15  ;;  %v41_v18 = vld [vmem:[%s1438_s1 + $0x50] sm:$0xff]  ;;  %v42_v19 = vld [vmem:[%s1438_s1 + $0x58] sm:$0xff]  ;;  %v43_v21 = vld [vmem:[%s1438_s1 + $0x60] sm:$0xff] }
   0xa   :  { %1119 = vmatpush3.bf16.msra.mxu0 %v1116_v7  ;;  %v1132_v20 = vpack.c.bf16 %v42_v19, %v41_v18  ;;  %v44_v22 = vld [vmem:[%s1438_s1 + $0x68] sm:$0xff]  ;;  %v45_v24 = vld [vmem:[%s1438_s1 + $0x70] sm:$0xff]  ;;  %v46_v25 = vld [vmem:[%s1438_s1 + $0x78] sm:$0xff]  ;;  %s1224_s1 = smov 112  }
   0xb   :  { %1121 = vmatprep.subr.bf16.mxu0 %v1120_v10  ;;  %v1136_v23 = vpack.c.bf16 %v44_v22, %v43_v21  ;;  %v1140_v26 = vpack.c.bf16 %v46_v25, %v45_v24  ;;  %v30_v27 = vld [vmem:[%s1437_s0 + $0x8] sm:$0xff]  ;;  %v1330_v28 = vld [vmem:[%s1441_s4] ss:$0 sm:$0xff]  ;;  %s1225_s0 = smov 16   ;;  %s1227_s4 = smov [#allocation2]  }
   0xc   :  { %v987_v33 = vld [vmem:[%s1439_s2] ss:$0 sm:$0xff]  ;;  %s1226_s2 = smov 120   ;;  %s978_s8 = sshll.u32 %s1227_s4, 4  ;;  %s979_s8 = int_to_ptr.vmem [resolvable:$true] %s978_s8 }
   0xd   :  { %s1198_s9 = scalar_lea.vmem %s979_s8, 32  ;;  %p1203_p1 = scmp.lt.s32.totalorder %s979_s8, %s979_s8 }
   0xe   :  { %1123 = vmatpush3.bf16.msra.mxu0 %v1120_v10  ;;  %p1199_p0 = scmp.ne.s32.totalorder %s979_s8, %s1198_s9  ;;  %p1204_p2 = scmp.lt.s32.totalorder %s1198_s9, %s1198_s9 }
   0xf   :  { %1125 = vmatprep.subr.bf16.mxu0 %v1124_v14 }
  0x10   :  { %p1205_p3 = por %p1204_p2, %p1203_p1 }
  0x12   :  { %1127 = vmatpush3.bf16.msra.mxu0 %v1124_v14  ;;  %p1206_p4 = pnand %p1205_p3, %p1199_p0 }
  0x13   :  { %1129 = vmatprep.subr.bf16.mxu0 %v1128_v17 }
  0x16   :  { %1131 = vmatpush3.bf16.msra.mxu0 %v1128_v17 }
  0x17   :  { %1133 = vmatprep.subr.bf16.mxu0 %v1132_v20 }
  0x1a   :  { %1135 = vmatpush3.bf16.msra.mxu0 %v1132_v20 }
  0x1b   :  { %1137 = vmatprep.subr.bf16.mxu0 %v1136_v23 }
  0x1e   :  { %1139 = vmatpush3.bf16.msra.mxu0 %v1136_v23 }
  0x1f   :  { %1141 = vmatprep.subr.bf16.mxu0 %v1140_v26 }
  0x22   :  { %1143 = vmatpush3.bf16.msra.mxu0 %v1140_v26 }
  0x25   :  { %1070 = vmatmul.mubr.f32.vlgmr.msra.gmra.mrb[0].mxu0 %v30_v27 }
  0xd6   :  { %v199_v29 = vpop.f32.mrb[0].mxu1 }
  0xd7   :  { %v200_v30 = vadd.f32 %v1330_v28, %v199_v29  ;;  %v1076_v31 = vpop.f32.mrb[1].mxu1 }
  0xd9   :  { %211 = vrot.lane.b32.xlu0 %v200_v30, %s1224_s1 }
  0xf8   :  { %v1071_v32 = vpop.f32.mrb[0].mxu0 }
  0xf9   :  { %v1337_v34 = vadd.f32 %v1071_v32, %v987_v33  ;;  %v120_v35 = vpop.f32.mrb[1].mxu0 }
  0xfa   :  { %v1339_v36 = vadd.f32 %v987_v33, %v120_v35 }
  0xfc   :  { %v203_v37 = vadd.f32 %v200_v30, %v1339_v36 }
  0xfe   :  { %v988_v38 = vmul.f32 -1.442695, %v203_v37 }
 0x100   :  { %1150 = vpow2.f32 %v988_v38 }
 0x10a   :  { %v1151_v39 = vpop.eup %1150 }
 0x10b   :  { %v207_v40 = vadd.f32 1.0, %v1151_v39 }
 0x10d   :  { %1152 = vrcp.f32 %v207_v40 }
 0x117   :  { %v1153_v41 = vpop.eup %1152 }
 0x118   :  { %v221_v47 = vsub.f32 1.0, %v1153_v41  ;;  %v227_v49 = vmul.f32 0.0, %v1153_v41 }
 0x14b   :  { %v212_v42 = vpop.permute.xlu0 %211 }
 0x14c   :  { %v214_v43 = vmul.f32 %v1153_v41, %v212_v42 }
 0x14e   :  { %216 = vrot.lane.b32.xlu0 %v214_v43, %s1225_s0 }
 0x1c0   :  { %v217_v44 = vpop.permute.xlu0 %216 }
 0x1c1   :  { %v219_v45 = vadd.f32 %v217_v44, %v1339_v36 }
 0x1c3   :  { %1154 = vtanh.f32 %v219_v45 }
 0x1cd   :  { %v1155_v46 = vpop.eup %1154 }
 0x1ce   :  { %223 = vrot.lane.b32.xlu1 %v1155_v46, %s1226_s2 }
 0x240   :  { %v224_v48 = vpop.permute.xlu1 %223 }
 0x241   :  { %v226_v50 = vmul.f32 %v224_v48, %v221_v47 }
 0x243   :  { %v228_v51 = vadd.f32 %v227_v49, %v226_v50 }
 0x245   :  { %230 = vrot.lane.b32.xlu1 %v228_v51, %s1226_s2  ;;  %v330_v5 = vrot.slane %v228_v51, 6 }
 0x2b7   :  { %v231_v52 = vpop.permute.xlu1 %230 }
 0x2b8   :  { %1080 = vmatmul.mubr.msk.f32.vlgmr.msra.gmra.mrb[2].mxu1 %vm129_vm1, %v231_v52 }
 0x2b9   :  { %1083 = vmatpush3.msra.mxu1 %v1261_v0  ;;  %1084 = vmatprep.mubr.msk.f32.mxu1 %vm1223_vm0, %v1222_v3 }
 0x2ba   :  { %1087 = vmatprep.subr.mxu1 %v1222_v3 }
 0x38b   :  { %v300_v53 = vpop.f32.mrb[2].mxu1 }
 0x38c   :  { %v301_v54 = vadd.f32 %v1330_v28, %v300_v53  ;;  %v1081_v55 = vpop.f32.mrb[3].mxu1 }
 0x38e   :  { %v305_v56 = vrot.slane %v301_v54, 6 }
 0x390   :  { %314 = vrot.lane.b32.xlu0 %v305_v56, %s1224_s1  ;;  %v307_v57 = vadd.f32 %v305_v56, %v1339_v36 }
 0x392   :  { %v990_v58 = vmul.f32 -1.442695, %v307_v57 }
 0x394   :  { %1156 = vpow2.f32 %v990_v58 }
 0x39e   :  { %v1157_v59 = vpop.eup %1156 }
 0x39f   :  { %v311_v60 = vadd.f32 1.0, %v1157_v59 }
 0x3a1   :  { %1158 = vrcp.f32 %v311_v60 }
 0x3ab   :  { %v1159_v61 = vpop.eup %1158 }
 0x3ac   :  { %v324_v6 = vsub.f32 1.0, %v1159_v61  ;;  %v332_v8 = vmul.f32 %v1159_v61, %v330_v5 }
 0x402   :  { %v315_v62 = vpop.permute.xlu0 %314 }
 0x403   :  { %v317_v63 = vmul.f32 %v1159_v61, %v315_v62 }
 0x405   :  { %319 = vrot.lane.b32.xlu1 %v317_v63, %s1225_s0 }
 0x477   :  { %v320_v1 = vpop.permute.xlu1 %319 }
 0x478   :  { %v322_v2 = vadd.f32 %v320_v1, %v1339_v36 }
 0x47a   :  { %1160 = vtanh.f32 %v322_v2 }
 0x484   :  { %v1161_v4 = vpop.eup %1160 }
 0x485   :  { %326 = vrot.lane.b32.xlu0 %v1161_v4, %s1226_s2 }
 0x4f7   :  { %v327_v7 = vpop.permute.xlu0 %326 }
 0x4f8   :  { %v329_v9 = vmul.f32 %v327_v7, %v324_v6 }
 0x4fa   :  { %v333_v10 = vadd.f32 %v332_v8, %v329_v9 }
 0x4fc   :  { %v335_v11 = vrot.slane %v333_v10, 2  ;;  %v436_v27 = vrot.slane %v333_v10, 6 }
 0x4fe   :  { %336 = vrot.lane.b32.xlu1 %v335_v11, %s1226_s2 }
 0x570   :  { %v337_v12 = vpop.permute.xlu1 %336 }
 0x571   :  { %1085 = vmatmul.mubr.msk.f32.vlgmr.msra.gmra.mrb[4].mxu1 %vm129_vm1, %v337_v12 }
 0x572   :  { %1088 = vmatpush3.msra.mxu1 %v1261_v0  ;;  %1089 = vmatprep.mubr.msk.f32.mxu1 %vm1223_vm0, %v1222_v3 }
 0x573   :  { %1092 = vmatprep.subr.mxu1 %v1222_v3 }
 0x644   :  { %v406_v13 = vpop.f32.mrb[4].mxu1 }
 0x645   :  { %v407_v14 = vadd.f32 %v1330_v28, %v406_v13  ;;  %v1086_v15 = vpop.f32.mrb[5].mxu1 }
 0x647   :  { %v411_v16 = vrot.slane %v407_v14, 4 }
 0x649   :  { %420 = vrot.lane.b32.xlu0 %v411_v16, %s1224_s1  ;;  %v413_v17 = vadd.f32 %v411_v16, %v1339_v36 }
 0x64b   :  { %v992_v18 = vmul.f32 -1.442695, %v413_v17 }
 0x64d   :  { %1162 = vpow2.f32 %v992_v18 }
 0x657   :  { %v1163_v19 = vpop.eup %1162 }
 0x658   :  { %v417_v20 = vadd.f32 1.0, %v1163_v19 }
 0x65a   :  { %1164 = vrcp.f32 %v417_v20 }
 0x664   :  { %v1165_v21 = vpop.eup %1164 }
 0x665   :  { %v430_v29 = vsub.f32 1.0, %v1165_v21  ;;  %v438_v31 = vmul.f32 %v1165_v21, %v436_v27 }
 0x6bb   :  { %v421_v22 = vpop.permute.xlu0 %420 }
 0x6bc   :  { %v423_v23 = vmul.f32 %v1165_v21, %v421_v22 }
 0x6be   :  { %425 = vrot.lane.b32.xlu1 %v423_v23, %s1225_s0 }
 0x730   :  { %v426_v24 = vpop.permute.xlu1 %425 }
 0x731   :  { %v428_v25 = vadd.f32 %v426_v24, %v1339_v36 }
 0x733   :  { %1166 = vtanh.f32 %v428_v25 }
 0x73d   :  { %v1167_v26 = vpop.eup %1166 }
 0x73e   :  { %432 = vrot.lane.b32.xlu0 %v1167_v26, %s1226_s2 }
 0x7b0   :  { %v433_v30 = vpop.permute.xlu0 %432 }
 0x7b1   :  { %v435_v32 = vmul.f32 %v433_v30, %v430_v29 }
 0x7b3   :  { %v439_v33 = vadd.f32 %v438_v31, %v435_v32 }
 0x7b5   :  { %v441_v35 = vrot.slane %v439_v33, 4  ;;  %v542_v52 = vrot.slane %v439_v33, 6 }
 0x7b7   :  { %442 = vrot.lane.b32.xlu1 %v441_v35, %s1226_s2 }
 0x829   :  { %v443_v37 = vpop.permute.xlu1 %442 }
 0x82a   :  { %1090 = vmatmul.mubr.msk.f32.vlgmr.msra.gmra.mrb[6].mxu1 %vm129_vm1, %v443_v37 }
 0x82b   :  { %1093 = vmatpush3.msra.mxu1 %v1261_v0  ;;  %1094 = vmatprep.mubr.msk.f32.mxu1 %vm1223_vm0, %v1222_v3 }
 0x82c   :  { %1097 = vmatprep.subr.mxu1 %v1222_v3 }
 0x8fd   :  { %v512_v38 = vpop.f32.mrb[6].mxu1 }
 0x8fe   :  { %v513_v39 = vadd.f32 %v1330_v28, %v512_v38  ;;  %v1091_v40 = vpop.f32.mrb[7].mxu1 }
 0x900   :  { %v517_v41 = vrot.slane %v513_v39, 2 }
 0x902   :  { %526 = vrot.lane.b32.xlu0 %v517_v41, %s1224_s1  ;;  %v519_v42 = vadd.f32 %v517_v41, %v1339_v36 }
 0x904   :  { %v994_v43 = vmul.f32 -1.442695, %v519_v42 }
 0x906   :  { %1168 = vpow2.f32 %v994_v43 }
 0x910   :  { %v1169_v44 = vpop.eup %1168 }
 0x911   :  { %v523_v45 = vadd.f32 1.0, %v1169_v44 }
 0x913   :  { %1170 = vrcp.f32 %v523_v45 }
 0x91d   :  { %v1171_v46 = vpop.eup %1170 }
 0x91e   :  { %v536_v53 = vsub.f32 1.0, %v1171_v46  ;;  %v544_v55 = vmul.f32 %v1171_v46, %v542_v52 }
 0x974   :  { %v527_v47 = vpop.permute.xlu0 %526 }
 0x975   :  { %v529_v48 = vmul.f32 %v1171_v46, %v527_v47 }
 0x977   :  { %531 = vrot.lane.b32.xlu1 %v529_v48, %s1225_s0 }
 0x9e9   :  { %v532_v49 = vpop.permute.xlu1 %531 }
 0x9ea   :  { %v534_v50 = vadd.f32 %v532_v49, %v1339_v36 }
 0x9ec   :  { %1172 = vtanh.f32 %v534_v50 }
 0x9f6   :  { %v1173_v51 = vpop.eup %1172 }
 0x9f7   :  { %538 = vrot.lane.b32.xlu0 %v1173_v51, %s1226_s2 }
 0xa69   :  { %v539_v54 = vpop.permute.xlu0 %538 }
 0xa6a   :  { %v541_v56 = vmul.f32 %v539_v54, %v536_v53 }
 0xa6c   :  { %v545_v57 = vadd.f32 %v544_v55, %v541_v56 }
 0xa6e   :  { %v547_v58 = vrot.slane %v545_v57, 6 }
 0xa70   :  { %548 = vrot.lane.b32.xlu1 %v547_v58, %s1226_s2 }
 0xae2   :  { %v549_v59 = vpop.permute.xlu1 %548 }
 0xae3   :  { %1095 = vmatmul.mubr.msk.f32.vlgmr.msra.gmra.mrb[8].mxu1 %vm129_vm1, %v549_v59 }
 0xae4   :  { %1098 = vmatpush3.msra.mxu1 %v1261_v0  ;;  %1099 = vmatprep.mubr.msk.f32.mxu1 %vm1223_vm0, %v1222_v3 }
 0xae5   :  { %1102 = vmatprep.subr.mxu1 %v1222_v3 }
 0xbb6   :  { %v618_v36 = vpop.f32.mrb[8].mxu1 }
 0xbb7   :  { %v619_v60 = vadd.f32 %v1330_v28, %v618_v36  ;;  %v1096_v61 = vpop.f32.mrb[9].mxu1 }
 0xbb9   :  { %630 = vrot.lane.b32.xlu0 %v619_v60, %s1224_s1  ;;  %v622_v62 = vadd.f32 %v619_v60, %v1337_v34 }
 0xbbb   :  { %v996_v63 = vmul.f32 -1.442695, %v622_v62 }
 0xbbd   :  { %1174 = vpow2.f32 %v996_v63 }
 0xbc7   :  { %v1175_v1 = vpop.eup %1174 }
 0xbc8   :  { %v626_v2 = vadd.f32 1.0, %v1175_v1 }
 0xbca   :  { %1176 = vrcp.f32 %v626_v2 }
 0xbd4   :  { %v1177_v4 = vpop.eup %1176 }
 0xbd5   :  { %v640_v10 = vsub.f32 1.0, %v1177_v4  ;;  %v647_v12 = vmul.f32 %v1177_v4, %v547_v58 }
 0xc2b   :  { %v631_v5 = vpop.permute.xlu0 %630 }
 0xc2c   :  { %v633_v6 = vmul.f32 %v1177_v4, %v631_v5 }
 0xc2e   :  { %635 = vrot.lane.b32.xlu1 %v633_v6, %s1225_s0 }
 0xca0   :  { %v636_v7 = vpop.permute.xlu1 %635 }
 0xca1   :  { %v638_v8 = vadd.f32 %v636_v7, %v1337_v34 }
 0xca3   :  { %1178 = vtanh.f32 %v638_v8 }
 0xcad   :  { %v1179_v9 = vpop.eup %1178 }
 0xcae   :  { %642 = vrot.lane.b32.xlu0 %v1179_v9, %s1226_s2 }
 0xd20   :  { %v643_v11 = vpop.permute.xlu0 %642 }
 0xd21   :  { %v645_v13 = vmul.f32 %v643_v11, %v640_v10 }
 0xd23   :  { %v648_v14 = vadd.f32 %v647_v12, %v645_v13 }
 0xd25   :  { %650 = vrot.lane.b32.xlu1 %v648_v14, %s1226_s2  ;;  %v750_v31 = vrot.slane %v648_v14, 6 }
 0xd97   :  { %v651_v15 = vpop.permute.xlu1 %650 }
 0xd98   :  { %1100 = vmatmul.mubr.msk.f32.vlgmr.msra.gmra.mrb[10].mxu1 %vm129_vm1, %v651_v15 }
 0xd99   :  { %1103 = vmatpush3.msra.mxu1 %v1261_v0  ;;  %1104 = vmatprep.mubr.msk.f32.mxu1 %vm1223_vm0, %v1222_v3 }
 0xd9a   :  { %1107 = vmatprep.subr.mxu1 %v1222_v3 }
 0xe6b   :  { %v720_v16 = vpop.f32.mrb[10].mxu1 }
 0xe6c   :  { %v721_v17 = vadd.f32 %v1330_v28, %v720_v16  ;;  %v1101_v18 = vpop.f32.mrb[11].mxu1 }
 0xe6e   :  { %v725_v19 = vrot.slane %v721_v17, 6 }
 0xe70   :  { %734 = vrot.lane.b32.xlu0 %v725_v19, %s1224_s1  ;;  %v727_v20 = vadd.f32 %v725_v19, %v1337_v34 }
 0xe72   :  { %v998_v21 = vmul.f32 -1.442695, %v727_v20 }
 0xe74   :  { %1180 = vpow2.f32 %v998_v21 }
 0xe7e   :  { %v1181_v22 = vpop.eup %1180 }
 0xe7f   :  { %v731_v23 = vadd.f32 1.0, %v1181_v22 }
 0xe81   :  { %1182 = vrcp.f32 %v731_v23 }
 0xe8b   :  { %v1183_v24 = vpop.eup %1182 }
 0xe8c   :  { %v744_v32 = vsub.f32 1.0, %v1183_v24  ;;  %v752_v35 = vmul.f32 %v1183_v24, %v750_v31 }
 0xee2   :  { %v735_v25 = vpop.permute.xlu0 %734 }
 0xee3   :  { %v737_v26 = vmul.f32 %v1183_v24, %v735_v25 }
 0xee5   :  { %739 = vrot.lane.b32.xlu1 %v737_v26, %s1225_s0 }
 0xf57   :  { %v740_v27 = vpop.permute.xlu1 %739 }
 0xf58   :  { %v742_v29 = vadd.f32 %v740_v27, %v1337_v34 }
 0xf5a   :  { %1184 = vtanh.f32 %v742_v29 }
 0xf64   :  { %v1185_v30 = vpop.eup %1184 }
 0xf65   :  { %746 = vrot.lane.b32.xlu0 %v1185_v30, %s1226_s2 }
 0xfd7   :  { %v747_v33 = vpop.permute.xlu0 %746 }
 0xfd8   :  { %v749_v37 = vmul.f32 %v747_v33, %v744_v32 }
 0xfda   :  { %v753_v38 = vadd.f32 %v752_v35, %v749_v37 }
 0xfdc   :  { %v755_v39 = vrot.slane %v753_v38, 2  ;;  %v856_v53 = vrot.slane %v753_v38, 6 }
 0xfde   :  { %756 = vrot.lane.b32.xlu1 %v755_v39, %s1226_s2 }
0x1050   :  { %v757_v40 = vpop.permute.xlu1 %756 }
0x1051   :  { %1105 = vmatmul.mubr.msk.f32.vlgmr.msra.gmra.mrb[12].mxu1 %vm129_vm1, %v757_v40 }
0x1052   :  { %1108 = vmatpush3.msra.mxu1 %v1261_v0  ;;  %1109 = vmatprep.mubr.msk.f32.mxu1 %vm1223_vm0, %v1222_v3 }
0x1124   :  { %v826_v41 = vpop.f32.mrb[12].mxu1 }
0x1125   :  { %v827_v42 = vadd.f32 %v1330_v28, %v826_v41  ;;  %v1106_v43 = vpop.f32.mrb[13].mxu1 }
0x1127   :  { %v831_v44 = vrot.slane %v827_v42, 4 }
0x1129   :  { %840 = vrot.lane.b32.xlu0 %v831_v44, %s1224_s1  ;;  %v833_v45 = vadd.f32 %v831_v44, %v1337_v34 }
0x112b   :  { %v1000_v46 = vmul.f32 -1.442695, %v833_v45 }
0x112d   :  { %1186 = vpow2.f32 %v1000_v46 }
0x1137   :  { %v1187_v47 = vpop.eup %1186 }
0x1138   :  { %v837_v48 = vadd.f32 1.0, %v1187_v47 }
0x113a   :  { %1188 = vrcp.f32 %v837_v48 }
0x1144   :  { %v1189_v49 = vpop.eup %1188 }
0x1145   :  { %v850_v54 = vsub.f32 1.0, %v1189_v49  ;;  %v858_v56 = vmul.f32 %v1189_v49, %v856_v53 }
0x119b   :  { %v841_v50 = vpop.permute.xlu0 %840 }
0x119c   :  { %v843_v0 = vmul.f32 %v1189_v49, %v841_v50 }
0x119e   :  { %845 = vrot.lane.b32.xlu1 %v843_v0, %s1225_s0 }
0x1210   :  { %v846_v3 = vpop.permute.xlu1 %845 }
0x1211   :  { %v848_v51 = vadd.f32 %v846_v3, %v1337_v34 }
0x1213   :  { %1190 = vtanh.f32 %v848_v51 }
0x121d   :  { %v1191_v52 = vpop.eup %1190 }
0x121e   :  { %852 = vrot.lane.b32.xlu0 %v1191_v52, %s1226_s2 }
0x1290   :  { %v853_v55 = vpop.permute.xlu0 %852 }
0x1291   :  { %v855_v57 = vmul.f32 %v853_v55, %v850_v54 }
0x1293   :  { %v859_v58 = vadd.f32 %v858_v56, %v855_v57 }
0x1295   :  { %v861_v59 = vrot.slane %v859_v58, 4  ;;  %v962_v11 = vrot.slane %v859_v58, 6 }
0x1297   :  { %862 = vrot.lane.b32.xlu1 %v861_v59, %s1226_s2 }
0x1309   :  { %v863_v36 = vpop.permute.xlu1 %862 }
0x130a   :  { %1110 = vmatmul.mubr.msk.f32.vlgmr.msra.gmra.mrb[14].mxu1 %vm129_vm1, %v863_v36 }
0x13dd   :  { %v932_v60 = vpop.f32.mrb[14].mxu1 }
0x13de   :  { %v933_v61 = vadd.f32 %v1330_v28, %v932_v60  ;;  %v1111_v62 = vpop.f32.mrb[15].mxu1 }
0x13e0   :  { %v937_v63 = vrot.slane %v933_v61, 2 }
0x13e2   :  { %946 = vrot.lane.b32.xlu0 %v937_v63, %s1224_s1  ;;  %v939_v1 = vadd.f32 %v937_v63, %v1337_v34 }
0x13e4   :  { %v1002_v2 = vmul.f32 -1.442695, %v939_v1 }
0x13e6   :  { %1192 = vpow2.f32 %v1002_v2 }
0x13f0   :  { %v1193_v4 = vpop.eup %1192 }
0x13f1   :  { %v943_v5 = vadd.f32 1.0, %v1193_v4 }
0x13f3   :  { %1194 = vrcp.f32 %v943_v5 }
0x13fd   :  { %v1195_v6 = vpop.eup %1194 }
0x13fe   :  { %v956_v12 = vsub.f32 1.0, %v1195_v6  ;;  %v964_v14 = vmul.f32 %v1195_v6, %v962_v11 }
0x1454   :  { %v947_v7 = vpop.permute.xlu0 %946 }
0x1455   :  { %v949_v8 = vmul.f32 %v1195_v6, %v947_v7 }
0x1457   :  { %951 = vrot.lane.b32.xlu1 %v949_v8, %s1225_s0 }
0x14c9   :  { %v952_v9 = vpop.permute.xlu1 %951 }
0x14ca   :  { %v954_v10 = vadd.f32 %v952_v9, %v1337_v34 }
0x14cc   :  { %1196 = vtanh.f32 %v954_v10 }
0x14d6   :  { %v1197_v28 = vpop.eup %1196 }
0x14d7   :  { %958 = vrot.lane.b32.xlu0 %v1197_v28, %s1226_s2 }
0x1549   :  { %v959_v13 = vpop.permute.xlu0 %958 }
0x154a   :  { %v961_v15 = vmul.f32 %v959_v13, %v956_v12 }
0x154c   :  { %v965_v16 = vadd.f32 %v964_v14, %v961_v15 }
0x154e   :  { %967 = vrot.lane.b32.xlu1 %v965_v16, %s1226_s2 }
0x15c0   :  { %v968_v17 = vpop.permute.xlu1 %967 }
0x15c1   :  { %971 = vst.msk [vmem:[#allocation2 - $0x6] sm:$0xc0] %vm970_vm2, %v968_v17 }
0x15c2   :  { %1209 = shalt.err (!%p1206_p4)
}
0x15c3   :  { %s1210_s12 = scalar_lea.hbm %s1442_s5, 32 }
0x15c4   :  { %p1211_p5 = scmp.ne.s32.totalorder %s1442_s5, %s1210_s12  ;;  %p1214_p6 = scmp.lt.u32.totalorder %s1210_s12, %s1442_s5 }
0x15c6   :  { %p1216_p7 = pnand %p1214_p6, %p1211_p5 }
0x15c8   :  { %1219 = shalt.err (!%p1216_p7)
}
0x15c9   :  { %981 = dma.vmem_to_hbm [thread:$0]  %s979_s8, 32, %s1442_s5, [#allocation3]  }
0x15ca   :  { %1220 = dma.done.wait [#allocation3], 32  }
0x15cb   :  { %1221 = vsyncadd [#allocation3], 4294967264 }
0x15cc   :  { %985 = vsyncpa [#allocation3], 1 }

</bundles_post_ra>
